<compile_context>
chip_gen: v7x
topology: tpu7x:2x2x1
jax: 0.10.0
libtpu: 0.0.40
codegen_flags: <defaults>
</compile_context>

<pallas_src>
import functools

import jax
import jax.numpy as jnp
from jax.experimental import pallas as pl
from jax.experimental.pallas import tpu as pltpu

_MiB = 1024 * 1024


def _tanh_kernel(x_ref, o_ref, *, compute_dtype):
    # Elementwise tanh on the current VMEM tile (EUP transcendental slot).
    o_ref[...] = jnp.tanh(x_ref[...].astype(compute_dtype)).astype(o_ref.dtype)


def _device_generation():
    """Best-effort TPU generation string ('v5', 'v6', 'v7', ...) or None."""
    try:
        kind = jax.devices()[0].device_kind.lower()
    except Exception:
        return None
    for gen in ("v7", "v6", "v5", "v4", "v3", "v2"):
        if gen in kind:
            return gen
    return None


def _generation_defaults(gen):
    """(target_block_bytes, vmem_limit_bytes) per TPU generation."""
    if gen in ("v5", "v6"):
        # 128 MiB VMEM: 8 MiB blocks -> 2 arrays x 2 pipeline bufs = 32 MiB.
        return 8 * _MiB, 72 * _MiB
    if gen == "v7":
        # 64 MiB VMEM per TensorCore: 4 MiB blocks -> 16 MiB of buffers.
        return 4 * _MiB, 48 * _MiB
    # Unknown / older generations: stay conservative.
    return 2 * _MiB, 32 * _MiB


def _choose_block_rows(rows, C, itemsize, packing, target_block_bytes):
    """Pick the row-tile size for the (rows, C) slab."""
    if rows <= packing:
        # Single full-extent block: block dims == array dims bypass the
        # (8, 128) alignment rule, so any small `rows` value is legal.
        return rows
    tr = target_block_bytes // (C * itemsize)
    tr = max(packing, (tr // packing) * packing)
    tr = min(tr, rows)
    steps = pl.cdiv(rows, tr)
    # Megacore heuristic: v7x shards the "parallel" axis across 2 TensorCores.
    # Prefer an even step count (balanced cores) and >= 4 steps (>= 2 blocks
    # per core, so each core overlaps output writeback with the next read).
    # No-op on v5e/v6e beyond slightly smaller (still MiB-scale) blocks.
    desired = max(steps, 4)
    if desired % 2:
        desired += 1
    if desired != steps and rows >= desired * packing:
        cand = pl.cdiv(rows, desired)
        cand = max(packing, ((cand + packing - 1) // packing) * packing)
        tr = min(tr, cand)
    return tr


def _tanh_2d(x2d, *, compute_dtype, target_block_bytes, vmem_limit_bytes,
             donate_input=False):
    """Launch the streaming tanh kernel over a (rows, C) slab (C % 128 == 0)."""
    rows, C = x2d.shape
    itemsize = jnp.dtype(x2d.dtype).itemsize
    packing = max(8, 32 // itemsize)  # sublane packing: 8 / 16 / 32 rows
    tr = _choose_block_rows(rows, C, itemsize, packing, target_block_bytes)
    grid = (pl.cdiv(rows, tr),)       # ragged last block is fine (masked store)

    kernel = functools.partial(_tanh_kernel, compute_dtype=compute_dtype)
    return pl.pallas_call(
        kernel,
        out_shape=jax.ShapeDtypeStruct((rows, C), x2d.dtype),
        grid=grid,
        in_specs=[pl.BlockSpec((tr, C), lambda i: (i, 0))],
        out_specs=pl.BlockSpec((tr, C), lambda i: (i, 0)),
        compiler_params=pltpu.CompilerParams(
            dimension_semantics=("parallel",),
            vmem_limit_bytes=vmem_limit_bytes,
        ),
        cost_estimate=pl.CostEstimate(
            flops=0,
            transcendentals=rows * C,
            bytes_accessed=2 * rows * C * itemsize,
        ),
        # Aliasing halves the HBM footprint when the caller donates x; it
        # never changes correctness (XLA copies if x is still live).
        input_output_aliases=({0: 0} if donate_input else {}),
    )(x2d)


def tanh_forward(x, *, target_block_bytes=None, vmem_limit_bytes=None,
                 donate_input=False):
    """Applies tanh elementwise via a Pallas TPU kernel. Preserves shape/dtype."""
    orig_shape = x.shape
    orig_dtype = x.dtype
    if not jnp.issubdtype(orig_dtype, jnp.floating):
        raise TypeError(f"Tanh.forward expects a floating dtype, got {orig_dtype}")
    n = x.size
    if n == 0:
        return x

    gen = _device_generation()
    default_blk, default_vmem = _generation_defaults(gen)
    if target_block_bytes is None:
        target_block_bytes = default_blk
    if vmem_limit_bytes is None:
        vmem_limit_bytes = default_vmem

    # bf16 has a native EUP path on v6e/v7x; v5e (no bf16 VPU/EUP) and every
    # other floating dtype compute in f32 (a no-op cast for f32 inputs).
    if orig_dtype == jnp.bfloat16 and gen in ("v6", "v7"):
        compute_dtype = jnp.bfloat16
    else:
        compute_dtype = jnp.float32

    itemsize = jnp.dtype(orig_dtype).itemsize
    packing = max(8, 32 // itemsize)
    flat = x.reshape(-1)

    # Widest lane dim C (multiple of 128) that divides n exactly (no padding),
    # preferring one that also yields >= `packing` rows so sublanes are fully
    # used. Rows need NOT be a multiple of the packing: the ragged last
    # row-block is handled by pl.cdiv + masked stores.
    lane_candidates = (4096, 2048, 1024, 512, 256, 128)
    C = None
    for cand in lane_candidates:
        if n % cand == 0:
            if C is None:
                C = cand
            if n // cand >= packing:
                C = cand
                break

    tail = None
    if C is None:
        # n is not a multiple of 128 (rare): stream the 128-aligned prefix
        # through the kernel and handle the tiny (<128 element) tail with
        # plain XLA, instead of padding + slicing the whole array (which would
        # add two extra full-size HBM passes to a bandwidth-bound op).
        C = 128
        n_main = (n // C) * C
        if n_main == 0:
            out = jnp.tanh(flat.astype(compute_dtype)).astype(orig_dtype)
            return out.reshape(orig_shape)
        tail = flat[n_main:]
        flat = flat[:n_main]

    rows = flat.size // C
    out2d = _tanh_2d(
        flat.reshape(rows, C),
        compute_dtype=compute_dtype,
        target_block_bytes=target_block_bytes,
        vmem_limit_bytes=vmem_limit_bytes,
        donate_input=donate_input,
    )
    out_flat = out2d.reshape(-1)
    if tail is not None:
        tail_out = jnp.tanh(tail.astype(compute_dtype)).astype(orig_dtype)
        out_flat = jnp.concatenate([out_flat, tail_out])
    return out_flat.reshape(orig_shape)


if __name__ == "__main__":
    key = jax.random.PRNGKey(0)
    # Small NCHW-shaped input consistent with a conv-net activation.
    x = jax.random.normal(key, (2, 4, 16, 16), dtype=jnp.float32)

    y = tanh_forward(x)
    jax.block_until_ready(y)

    # Sanity check against the reference forward: s0.tanh()
    y_ref = jnp.tanh(x)
    assert y.shape == x.shape and y.dtype == x.dtype
    # f32 path tolerance; relax to ~2e-2 if testing the native-bf16 path.
    assert jnp.max(jnp.abs(y - y_ref)) < 1e-6

    print("KERNEL_OK")
</pallas_src>

<mosaic_0001>
module attributes {stable_mosaic.version = 11 : i64} {
  func.func @_tanh_kernel(%arg0: i32, %arg1: memref<8x256xf32, #tpu.memory_space<vmem>>, %arg2: memref<8x256xf32, #tpu.memory_space<vmem>>) attributes {dimension_semantics = [#tpu.dimension_semantics<parallel>], iteration_bounds = array<i64: 1>, scalar_prefetch = 0 : i64, scratch_operands = 0 : i64, tpu.core_type = #tpu.core_type<tc>, window_params = [{transform_indices = @transform_0, window_bounds = array<i64: 8, 256>}, {transform_indices = @transform_1, window_bounds = array<i64: 8, 256>}]} {
    %c0 = arith.constant 0 : index
    %c0_0 = arith.constant 0 : index
    %0 = vector.load %arg1[%c0, %c0_0] : memref<8x256xf32, #tpu.memory_space<vmem>>, vector<8x256xf32>
    %1 = math.tanh %0 : vector<8x256xf32>
    %c0_1 = arith.constant 0 : index
    %c0_2 = arith.constant 0 : index
    %2 = vector.load %arg2[%c0_1, %c0_2] : memref<8x256xf32, #tpu.memory_space<vmem>>, vector<8x256xf32>
    tpu.vector_store %arg2[%c0_1, %c0_2], %1 {strides = array<i32>} : memref<8x256xf32, #tpu.memory_space<vmem>>, vector<8x256xf32>,
    return
  }
  func.func @transform_0(%arg0: i32) -> (i32, i32) {
    %c0_i32 = arith.constant 0 : i32
    %c0_i32_0 = arith.constant 0 : i32
    return %arg0, %c0_i32 : i32, i32
  }
  func.func @transform_1(%arg0: i32) -> (i32, i32) {
    %c0_i32 = arith.constant 0 : i32
    %c0_i32_0 = arith.constant 0 : i32
    return %arg0, %c0_i32 : i32, i32
  }
}

</mosaic_0001>

<bundles_post_ra>
// kernel: tpu_custom_call.1
= control target key start
LH: loop header
LB: loop body
LE: loop exit
PB: predicated region body
PF: predicated region fallthrough
CT: control target
= control target key end

     0   :  { %6 = vsyncpa [#allocation3], 0  ;;  %s132_s0 = inlined_call_operand.hbm [shape: f32[8,256], index: 0, kind: input, shape index: {}]   ;;  %s133_s1 = inlined_call_operand.hbm [shape: f32[8,256], index: 1, kind: output, shape index: {}]  }
   0x1   :  { %7 = vsyncpa [#allocation4], 0  ;;  %s96_s6 = smov [#allocation2]   ;;  %s48_s10 = scalar_lea.hbm %s132_s0, 256 }
   0x2   :  { %s14_s7 = sshll.u32 %s96_s6, 4  ;;  %p49_p0 = scmp.ne.s32.totalorder %s132_s0, %s48_s10  ;;  %s15_s7 = int_to_ptr.vmem [resolvable:$true] %s14_s7 }
   0x3   :  { %p52_p1 = scmp.lt.u32.totalorder %s48_s10, %s132_s0 }
   0x5   :  { %p54_p2 = pnand %p52_p1, %p49_p0 }
   0x7   :  { %57 = shalt.err (!%p54_p2)
}
   0x8   :  { %s58_s15 = scalar_lea.vmem %s15_s7, 256  ;;  %p63_p4 = scmp.lt.s32.totalorder %s15_s7, %s15_s7 }
   0x9   :  { %p59_p3 = scmp.ne.s32.totalorder %s15_s7, %s58_s15  ;;  %p64_p5 = scmp.lt.s32.totalorder %s58_s15, %s58_s15 }
   0xb   :  { %p65_p6 = por %p64_p5, %p63_p4 }
   0xd   :  { %p66_p7 = pnand %p65_p6, %p59_p3 }
   0xf   :  { %69 = shalt.err (!%p66_p7)
}
  0x10   :  { %17 = dma.hbm_to_vmem [thread:$0]  %s132_s0, 256, %s15_s7, [#allocation3]  }
  0x11   :  { %92 = dma.done.wait [#allocation3], 256  }
  0x12   :  { %93 = vsyncadd [#allocation3], 4294967040  ;;  %v21_v0 = vld [vmem:[#allocation2] sm:$0xff]  ;;  %v22_v1 = vld [vmem:[#allocation2 + $0x8] sm:$0xff]  ;;  %s97_s18 = smov [#allocation5]  }
  0x13   :  { %44 = vtanh.f32 %v21_v0  ;;  %s33_s19 = sshll.u32 %s97_s18, 4  ;;  %s34_s19 = int_to_ptr.vmem [resolvable:$true] %s33_s19 }
  0x14   :  { %46 = vtanh.f32 %v22_v1  ;;  %s70_s20 = scalar_lea.vmem %s34_s19, 256  ;;  %p75_p9 = scmp.lt.s32.totalorder %s34_s19, %s34_s19 }
  0x15   :  { %p71_p8 = scmp.ne.s32.totalorder %s34_s19, %s70_s20  ;;  %p76_p10 = scmp.lt.s32.totalorder %s70_s20, %s70_s20 }
  0x17   :  { %p77_p11 = por %p76_p10, %p75_p9 }
  0x19   :  { %p78_p12 = pnand %p77_p11, %p71_p8 }
  0x1d   :  { %v45_v2 = vpop.eup %44 }
  0x1e   :  { %v47_v3 = vpop.eup %46  ;;  %25 = vst [vmem:[#allocation5] sm:$0xff] %v45_v2 }
  0x1f   :  { %26 = vst [vmem:[#allocation5 + $0x8] sm:$0xff] %v47_v3 }
  0x20   :  { %81 = shalt.err (!%p78_p12)
}
  0x21   :  { %s82_s22 = scalar_lea.hbm %s133_s1, 256 }
  0x22   :  { %p83_p13 = scmp.ne.s32.totalorder %s133_s1, %s82_s22  ;;  %p86_p0 = scmp.lt.u32.totalorder %s82_s22, %s133_s1 }
  0x24   :  { %p88_p1 = pnand %p86_p0, %p83_p13 }
  0x26   :  { %91 = shalt.err (!%p88_p1)
}
  0x27   :  { %36 = dma.vmem_to_hbm [thread:$0]  %s34_s19, 256, %s133_s1, [#allocation4]  }
  0x28   :  { %94 = dma.done.wait [#allocation4], 256  }
  0x29   :  { %95 = vsyncadd [#allocation4], 4294967040 }
  0x2a   :  { %40 = vsyncpa [#allocation3], 1 }
  0x2b   :  { %41 = vsyncpa [#allocation4], 1 }

</bundles_post_ra>
